<compile_context>
chip_gen: v6e
topology: v6e:2x2x1
jax: 0.10.0
libtpu: 0.0.40
codegen_flags: <defaults>
</compile_context>

<pallas_src>
import jax
import jax.numpy as jnp
from jax.experimental import pallas as pl
from jax.experimental.pallas import tpu as pltpu


def d_net_gauss_kernel(x_ref, w1_ref, b1_ref, w2_ref, b2_ref, w3_ref, b3_ref,
                       o_ref):
    # Cast activations to the weight dtype for the MXU (no-op when both f32);
    # accumulation is always f32 via preferred_element_type.
    x = x_ref[...].astype(w1_ref.dtype)

    # lin1 (+ dropout: identity in eval) + relu
    h1 = jnp.dot(x, w1_ref[...], preferred_element_type=jnp.float32) + b1_ref[...]
    h1 = jnp.maximum(h1, 0.0)

    # lin2 (+ dropout: identity in eval) + relu
    h2 = jnp.dot(h1.astype(w2_ref.dtype), w2_ref[...],
                 preferred_element_type=jnp.float32) + b2_ref[...]
    h2 = jnp.maximum(h2, 0.0)

    # lin3 + sigmoid (stable form: exp of a non-positive argument -> EUP)
    h3 = jnp.dot(h2.astype(w3_ref.dtype), w3_ref[...],
                 preferred_element_type=jnp.float32) + b3_ref[...]
    z = jnp.exp(-jnp.abs(h3))
    r = pl.reciprocal(1.0 + z, approx=False)   # exact: matches sigmoid to f32
    o_ref[...] = jnp.where(h3 >= 0, r, z * r).astype(o_ref.dtype)


def prepare_params(params, dtype=jnp.float32):
    """One-time prep: transpose PyTorch (out, in) weights to (in, out), zero-pad
    the hidden width to a multiple of 128 (lane-dense h1/h2), reshape biases to
    (1, out). Call once and reuse; the per-call wrapper does no array glue."""
    w1, b1 = params["w1"], params["b1"]   # (N, z_dim), (N,)
    w2, b2 = params["w2"], params["b2"]   # (N, N),     (N,)
    w3, b3 = params["w3"], params["b3"]   # (1, N),     (1,)
    N, z_dim = w1.shape
    n_pad = ((N + 127) // 128) * 128

    w1t = jnp.zeros((z_dim, n_pad), dtype).at[:, :N].set(w1.T.astype(dtype))
    w2t = jnp.zeros((n_pad, n_pad), dtype).at[:N, :N].set(w2.T.astype(dtype))
    w3t = jnp.zeros((n_pad, 1), dtype).at[:N, :].set(w3.T.astype(dtype))
    # Biases stay f32: they add onto the f32 accumulators.
    b1r = jnp.zeros((1, n_pad), jnp.float32).at[:, :N].set(b1.astype(jnp.float32))
    b2r = jnp.zeros((1, n_pad), jnp.float32).at[:, :N].set(b2.astype(jnp.float32))
    b3r = b3.astype(jnp.float32).reshape(1, 1)
    return (w1t, b1r, w2t, b2r, w3t, b3r)


def d_net_gauss_forward(x, prepared, *, block_b=512):
    """x: [B, z_dim]. prepared: output of prepare_params (pre-transposed /
    padded). Weights stay resident in VMEM (constant index_map); x / out are
    tiled over the batch axis when B divides block_b so their HBM traffic is
    double-buffered behind the compute."""
    w1t, b1r, w2t, b2r, w3t, b3r = prepared
    B, z_dim = x.shape

    # Single grid step for small / irregular B; otherwise tile the batch axis.
    if B <= block_b or B % block_b != 0:
        block_b = B
    grid = (B // block_b,)

    x_spec = pl.BlockSpec((block_b, z_dim), lambda i: (i, 0))
    o_spec = pl.BlockSpec((block_b, 1), lambda i: (i, 0))
    full = lambda a: pl.BlockSpec(a.shape, lambda i: (0, 0))  # resident weights

    return pl.pallas_call(
        d_net_gauss_kernel,
        out_shape=jax.ShapeDtypeStruct((B, 1), jnp.float32),
        grid=grid,
        in_specs=[x_spec,
                  full(w1t), full(b1r),
                  full(w2t), full(b2r),
                  full(w3t), full(b3r)],
        out_specs=o_spec,
        compiler_params=pltpu.CompilerParams(
            # batch axis is independent -> shard across both TCs on v7x
            dimension_semantics=("parallel",)),
    )(x, w1t, b1r, w2t, b2r, w3t, b3r)


def init_params(key, N, z_dim):
    """PyTorch nn.Linear default init: U(-k, k), k = 1/sqrt(fan_in)."""
    ks = jax.random.split(key, 6)

    def lin(kw, kb, out_f, in_f):
        bound = 1.0 / jnp.sqrt(in_f)
        w = jax.random.uniform(kw, (out_f, in_f), jnp.float32, -bound, bound)
        b = jax.random.uniform(kb, (out_f,), jnp.float32, -bound, bound)
        return w, b

    w1, b1 = lin(ks[0], ks[1], N, z_dim)
    w2, b2 = lin(ks[2], ks[3], N, N)
    w3, b3 = lin(ks[4], ks[5], 1, N)
    return {"w1": w1, "b1": b1, "w2": w2, "b2": b2, "w3": w3, "b3": b3}


def d_net_gauss_ref(x, p):
    h1 = jax.nn.relu(x @ p["w1"].T + p["b1"])
    h2 = jax.nn.relu(h1 @ p["w2"].T + p["b2"])
    return jax.nn.sigmoid(h2 @ p["w3"].T + p["b3"])


if __name__ == "__main__":
    # Small shapes consistent with the module: z_dim -> N -> N -> 1
    B, z_dim, N = 8, 8, 64

    key = jax.random.PRNGKey(0)
    k_x, k_p = jax.random.split(key)
    x = jax.random.normal(k_x, (B, z_dim), jnp.float32)
    params = init_params(k_p, N, z_dim)

    ref = d_net_gauss_ref(x, params)

    # f32 path (bit-faithful to the PyTorch module; tight tolerance).
    prepared_f32 = prepare_params(params, dtype=jnp.float32)
    out = jax.block_until_ready(d_net_gauss_forward(x, prepared_f32))
    assert out.shape == (B, 1)
    assert jnp.allclose(out, ref, atol=1e-5, rtol=1e-5)

    # bf16 matmul-operand path (MXU-native on v6e/v7x); f32 accumulate/biases.
    prepared_bf16 = prepare_params(params, dtype=jnp.bfloat16)
    out_bf16 = jax.block_until_ready(d_net_gauss_forward(x, prepared_bf16))
    assert out_bf16.shape == (B, 1)
    assert jnp.allclose(out_bf16, ref, atol=5e-2)

    # Batch-tiled path (grid > 1): weights resident, x/out double-buffered.
    B2 = 32
    x2 = jax.random.normal(jax.random.PRNGKey(1), (B2, z_dim), jnp.float32)
    ref2 = d_net_gauss_ref(x2, params)
    out2 = jax.block_until_ready(
        d_net_gauss_forward(x2, prepared_f32, block_b=16))
    assert out2.shape == (B2, 1)
    assert jnp.allclose(out2, ref2, atol=1e-5, rtol=1e-5)

    print("KERNEL_OK")
</pallas_src>

<mosaic_0001>
module attributes {stable_mosaic.version = 11 : i64} {
  func.func @d_net_gauss_kernel(%arg0: i32, %arg1: memref<8x8xf32, #tpu.memory_space<vmem>>, %arg2: memref<8x128xf32, #tpu.memory_space<vmem>>, %arg3: memref<1x128xf32, #tpu.memory_space<vmem>>, %arg4: memref<128x128xf32, #tpu.memory_space<vmem>>, %arg5: memref<1x128xf32, #tpu.memory_space<vmem>>, %arg6: memref<128x1xf32, #tpu.memory_space<vmem>>, %arg7: memref<1x1xf32, #tpu.memory_space<vmem>>, %arg8: memref<8x1xf32, #tpu.memory_space<vmem>>) attributes {dimension_semantics = [#tpu.dimension_semantics<parallel>], iteration_bounds = array<i64: 1>, scalar_prefetch = 0 : i64, scratch_operands = 0 : i64, tpu.core_type = #tpu.core_type<tc>, window_params = [{transform_indices = @transform_0, window_bounds = array<i64: 8, 8>}, {pipeline_mode = #tpu.pipeline_mode<synchronous>, transform_indices = @transform_1, window_bounds = array<i64: 8, 128>}, {pipeline_mode = #tpu.pipeline_mode<synchronous>, transform_indices = @transform_2, window_bounds = array<i64: 1, 128>}, {pipeline_mode = #tpu.pipeline_mode<synchronous>, transform_indices = @transform_3, window_bounds = array<i64: 128, 128>}, {pipeline_mode = #tpu.pipeline_mode<synchronous>, transform_indices = @transform_4, window_bounds = array<i64: 1, 128>}, {pipeline_mode = #tpu.pipeline_mode<synchronous>, transform_indices = @transform_5, window_bounds = array<i64: 128, 1>}, {pipeline_mode = #tpu.pipeline_mode<synchronous>, transform_indices = @transform_6, window_bounds = array<i64: 1, 1>}, {transform_indices = @transform_7, window_bounds = array<i64: 8, 1>}]} {
    %c0 = arith.constant 0 : index
    %c0_0 = arith.constant 0 : index
    %0 = vector.load %arg1[%c0, %c0_0] : memref<8x8xf32, #tpu.memory_space<vmem>>, vector<8x8xf32>
    %c0_1 = arith.constant 0 : index
    %c0_2 = arith.constant 0 : index
    %1 = vector.load %arg2[%c0_1, %c0_2] : memref<8x128xf32, #tpu.memory_space<vmem>>, vector<8x128xf32>
    %cst = arith.constant dense<0.000000e+00> : vector<8x128xf32>
    %2 = tpu.matmul %0, %1, %cst {dimension_numbers = #tpu.dot_dimension_numbers<[1], [0], [0], [1], [0, 0, 1, 1], [], []>} : vector<8x8xf32>, vector<8x128xf32>, vector<8x128xf32> -> vector<8x128xf32>
    %c0_3 = arith.constant 0 : index
    %c0_4 = arith.constant 0 : index
    %3 = vector.load %arg3[%c0_3, %c0_4] : memref<1x128xf32, #tpu.memory_space<vmem>>, vector<1x128xf32>
    %4 = vector.broadcast %3 : vector<1x128xf32> to vector<8x128xf32>
    %5 = arith.addf %2, %4 : vector<8x128xf32>
    %cst_5 = arith.constant 0.000000e+00 : f32
    %6 = vector.broadcast %cst_5 : f32 to vector<8x128xf32>
    %7 = arith.maximumf %5, %6 : vector<8x128xf32>
    %c0_6 = arith.constant 0 : index
    %c0_7 = arith.constant 0 : index
    %8 = vector.load %arg4[%c0_6, %c0_7] : memref<128x128xf32, #tpu.memory_space<vmem>>, vector<128x128xf32>
    %cst_8 = arith.constant dense<0.000000e+00> : vector<8x128xf32>
    %9 = tpu.matmul %7, %8, %cst_8 {dimension_numbers = #tpu.dot_dimension_numbers<[1], [0], [0], [1], [0, 0, 1, 1], [], []>} : vector<8x128xf32>, vector<128x128xf32>, vector<8x128xf32> -> vector<8x128xf32>
    %c0_9 = arith.constant 0 : index
    %c0_10 = arith.constant 0 : index
    %10 = vector.load %arg5[%c0_9, %c0_10] : memref<1x128xf32, #tpu.memory_space<vmem>>, vector<1x128xf32>
    %11 = vector.broadcast %10 : vector<1x128xf32> to vector<8x128xf32>
    %12 = arith.addf %9, %11 : vector<8x128xf32>
    %cst_11 = arith.constant 0.000000e+00 : f32
    %13 = vector.broadcast %cst_11 : f32 to vector<8x128xf32>
    %14 = arith.maximumf %12, %13 : vector<8x128xf32>
    %c0_12 = arith.constant 0 : index
    %c0_13 = arith.constant 0 : index
    %15 = vector.load %arg6[%c0_12, %c0_13] : memref<128x1xf32, #tpu.memory_space<vmem>>, vector<128x1xf32>
    %cst_14 = arith.constant dense<0.000000e+00> : vector<8x1xf32>
    %16 = tpu.matmul %14, %15, %cst_14 {dimension_numbers = #tpu.dot_dimension_numbers<[1], [0], [0], [1], [0, 0, 1, 1], [], []>} : vector<8x128xf32>, vector<128x1xf32>, vector<8x1xf32> -> vector<8x1xf32>
    %c0_15 = arith.constant 0 : index
    %c0_16 = arith.constant 0 : index
    %17 = vector.load %arg7[%c0_15, %c0_16] : memref<1x1xf32, #tpu.memory_space<vmem>>, vector<1x1xf32>
    %18 = vector.broadcast %17 : vector<1x1xf32> to vector<8x1xf32>
    %19 = arith.addf %16, %18 : vector<8x1xf32>
    %20 = math.absf %19 : vector<8x1xf32>
    %cst_17 = arith.constant 0.000000e+00 : f32
    %21 = vector.broadcast %cst_17 : f32 to vector<8x1xf32>
    %22 = arith.subf %21, %20 : vector<8x1xf32>
    %23 = math.exp %22 : vector<8x1xf32>
    %cst_18 = arith.constant 1.000000e+00 : f32
    %24 = vector.broadcast %cst_18 : f32 to vector<8x1xf32>
    %25 = arith.addf %24, %23 : vector<8x1xf32>
    %26 = tpu.reciprocal %25 : vector<8x1xf32> -> vector<8x1xf32>
    %cst_19 = arith.constant 0.000000e+00 : f32
    %27 = vector.broadcast %cst_19 : f32 to vector<8x1xf32>
    %28 = arith.cmpf oge, %19, %27 : vector<8x1xf32>
    %29 = arith.mulf %23, %26 : vector<8x1xf32>
    %30 = arith.select %28, %26, %29 : vector<8x1xi1>, vector<8x1xf32>
    %c0_20 = arith.constant 0 : index
    %c0_21 = arith.constant 0 : index
    %31 = vector.load %arg8[%c0_20, %c0_21] : memref<8x1xf32, #tpu.memory_space<vmem>>, vector<8x1xf32>
    tpu.vector_store %arg8[%c0_20, %c0_21], %30 {strides = array<i32>} : memref<8x1xf32, #tpu.memory_space<vmem>>, vector<8x1xf32>,
    return
  }
  func.func @transform_0(%arg0: i32) -> (i32, i32) {
    %c0_i32 = arith.constant 0 : i32
    %c0_i32_0 = arith.constant 0 : i32
    return %arg0, %c0_i32 : i32, i32
  }
  func.func @transform_1(%arg0: i32) -> (i32, i32) {
    %c0_i32 = arith.constant 0 : i32
    %c0_i32_0 = arith.constant 0 : i32
    %c0_i32_1 = arith.constant 0 : i32
    return %c0_i32, %c0_i32_0 : i32, i32
  }
  func.func @transform_2(%arg0: i32) -> (i32, i32) {
    %c0_i32 = arith.constant 0 : i32
    %c0_i32_0 = arith.constant 0 : i32
    %c0_i32_1 = arith.constant 0 : i32
    return %c0_i32, %c0_i32_0 : i32, i32
  }
  func.func @transform_3(%arg0: i32) -> (i32, i32) {
    %c0_i32 = arith.constant 0 : i32
    %c0_i32_0 = arith.constant 0 : i32
    %c0_i32_1 = arith.constant 0 : i32
    return %c0_i32, %c0_i32_0 : i32, i32
  }
  func.func @transform_4(%arg0: i32) -> (i32, i32) {
    %c0_i32 = arith.constant 0 : i32
    %c0_i32_0 = arith.constant 0 : i32
    %c0_i32_1 = arith.constant 0 : i32
    return %c0_i32, %c0_i32_0 : i32, i32
  }
  func.func @transform_5(%arg0: i32) -> (i32, i32) {
    %c0_i32 = arith.constant 0 : i32
    %c0_i32_0 = arith.constant 0 : i32
    %c0_i32_1 = arith.constant 0 : i32
    return %c0_i32, %c0_i32_0 : i32, i32
  }
  func.func @transform_6(%arg0: i32) -> (i32, i32) {
    %c0_i32 = arith.constant 0 : i32
    %c0_i32_0 = arith.constant 0 : i32
    %c0_i32_1 = arith.constant 0 : i32
    return %c0_i32, %c0_i32_0 : i32, i32
  }
  func.func @transform_7(%arg0: i32) -> (i32, i32) {
    %c0_i32 = arith.constant 0 : i32
    %c0_i32_0 = arith.constant 0 : i32
    return %arg0, %c0_i32 : i32, i32
  }
}

</mosaic_0001>

<bundles_post_ra>
// kernel: tpu_custom_call.1
= control target key start
LH: loop header
LB: loop body
LE: loop exit
PB: predicated region body
PF: predicated region fallthrough
CT: control target
= control target key end

     0   :  { %s704_s0 = inlined_call_operand.vmem [shape: f32[8,8], index: 0, kind: input, shape index: {}]   ;;  %s705_s1 = inlined_call_operand.hbm [shape: f32[8,128], index: 1, kind: input, shape index: {}]   ;;  %s706_s2 = inlined_call_operand.hbm [shape: f32[1,128], index: 2, kind: input, shape index: {}]   ;;  %s707_s3 = inlined_call_operand.vmem [shape: f32[128,128], index: 3, kind: input, shape index: {}]   ;;  %s708_s4 = inlined_call_operand.vmem [shape: f32[1,128], index: 4, kind: input, shape index: {}]   ;;  %s709_s5 = inlined_call_operand.vmem [shape: f32[128,1], index: 5, kind: input, shape index: {}]   ;;  %s710_s6 = inlined_call_operand.<no memory space> [shape: f32[1,1], index: 6, kind: input, shape index: {}]   ;;  %s711_s7 = inlined_call_operand.vmem [shape: f32[8,1], index: 7, kind: output, shape index: {}]  }
   0x1   :  { %v12_v0 = vstv %s710_s6 }
   0x2   :  { %13 = vst [vmem:[#allocation2] sm:$0x1] %v12_v0 }
   0x3   :  { %14 = vsyncpa [#allocation4], 0 }
   0x4   :  { %15 = vsyncpa [#allocation6], 0  ;;  %s507_s26 = smov [#allocation3]   ;;  %s508_s28 = smov [#allocation5]  }
   0x5   :  { %s24_s27 = sshll.u32 %s507_s26, 4  ;;  %s34_s29 = sshll.u32 %s508_s28, 4  ;;  %s25_s27 = int_to_ptr.vmem [resolvable:$true] %s24_s27  ;;  %s35_s29 = int_to_ptr.vmem [resolvable:$true] %s34_s29 }
   0x6   :  { %s471_s30 = scalar_lea.vmem %s25_s27, 128  ;;  %p476_p1 = scmp.lt.s32.totalorder %s25_s27, %s25_s27 }
   0x7   :  { %p472_p0 = scmp.ne.s32.totalorder %s25_s27, %s471_s30  ;;  %p477_p2 = scmp.lt.s32.totalorder %s471_s30, %s471_s30 }
   0x9   :  { %p478_p3 = por %p477_p2, %p476_p1 }
   0xb   :  { %p479_p4 = pnand %p478_p3, %p472_p0 }
   0xd   :  { %482 = shalt.err (!%p479_p4)
}
   0xe   :  { %27 = dma.hbm_to_vmem [thread:$0]  %s705_s1, 128, %s25_s27, [#allocation4]  }
   0xf   :  { %s491_s6 = scalar_lea.vmem %s35_s29, 16  ;;  %s495_s10 = scalar_lea.vmem %s35_s29, 32 }
  0x10   :  { %p492_p5 = scmp.ne.s32.totalorder %s35_s29, %s491_s6  ;;  %p496_p6 = scmp.lt.s32.totalorder %s35_s29, %s35_s29 }
  0x11   :  { %p497_p7 = scmp.lt.s32.totalorder %s495_s10, %s491_s6 }
  0x13   :  { %p498_p8 = por %p497_p7, %p496_p6 }
  0x15   :  { %p499_p9 = pnand %p498_p8, %p492_p5 }
  0x17   :  { %502 = shalt.err (!%p499_p9)
}
  0x18   :  { %37 = dma.hbm_to_vmem [thread:$0]  %s706_s2, 16, %s35_s29, [#allocation6]  }
  0x19   :  { %503 = dma.done.wait [#allocation4], 128  }
  0x1a   :  { %504 = vsyncadd [#allocation4], 4294967168 }
  0x1b   :  { %505 = dma.done.wait [#allocation6], 16  }
  0x1c   :  { %506 = vsyncadd [#allocation6], 4294967280  ;;  %v509_v1 = vmov 0.0   ;;  %vm510_vm0 = vmmov 0   ;;  %vm61_vm1 = vcmask 64512   ;;  %v53_v2 = vld [vmem:[#allocation3] sm:$0xff] }
  0x1d   :  { %380 = vmatprep.subr.mxu0 %v509_v1  ;;  %382 = vmatprep.mubr.msk.f32.mxu0 %vm510_vm0, %v509_v1  ;;  %v52_v3 = vld [vmem:[%s704_s0] sm:$0xff]  ;;  %v151_v4 = vld [vmem:[%s707_s3 + $0x78] sm:$0xff]  ;;  %v150_v5 = vld [vmem:[%s707_s3 + $0x70] sm:$0xff]  ;;  %vm332_vm2 = vcmask 7168  }
  0x1e   :  { %385 = vmatprep.subr.mxu1 %v509_v1  ;;  %417 = vmatprep.mubr.msk.f32.mxu1 %vm510_vm0, %v509_v1  ;;  %v149_v6 = vld [vmem:[%s707_s3 + $0x68] sm:$0xff]  ;;  %v148_v7 = vld [vmem:[%s707_s3 + $0x60] sm:$0xff]  ;;  %v147_v8 = vld [vmem:[%s707_s3 + $0x58] sm:$0xff] }
  0x1f   :  { %381 = vmatpush3.msra.mxu0 %v53_v2  ;;  %386 = vmatpush3.msra.mxu1 %v151_v4  ;;  %v146_v9 = vld [vmem:[%s707_s3 + $0x50] sm:$0xff]  ;;  %v145_v10 = vld [vmem:[%s707_s3 + $0x48] sm:$0xff]  ;;  %v144_v11 = vld [vmem:[%s707_s3 + $0x40] sm:$0xff] }
  0x20   :  { %383 = vmatmul.mubr.msk.f32.vlgmr.msra.gmra.mxu0 %vm61_vm1, %v52_v3  ;;  %387 = vmatprep.subr.mxu1 %v509_v1  ;;  %v143_v12 = vld [vmem:[%s707_s3 + $0x38] sm:$0xff]  ;;  %v142_v13 = vld [vmem:[%s707_s3 + $0x30] sm:$0xff]  ;;  %v141_v14 = vld [vmem:[%s707_s3 + $0x28] sm:$0xff] }
  0x21   :  { %388 = vmatpush3.msra.mxu1 %v150_v5  ;;  %420 = vmatprep.subr.mxu0 %v509_v1  ;;  %v140_v15 = vld [vmem:[%s707_s3 + $0x20] sm:$0xff]  ;;  %v139_v16 = vld [vmem:[%s707_s3 + $0x18] sm:$0xff]  ;;  %v138_v17 = vld [vmem:[%s707_s3 + $0x10] sm:$0xff] }
  0x22   :  { %389 = vmatprep.subr.mxu1 %v509_v1  ;;  %452 = vmatprep.mubr.msk.f32.mxu0 %vm510_vm0, %v509_v1  ;;  %v137_v18 = vld [vmem:[%s707_s3 + $0x8] sm:$0xff]  ;;  %v136_v19 = vld [vmem:[%s707_s3] sm:$0xff]  ;;  %v245_v20 = vld [vmem:[%s709_s5 + $0x78] sm:$0xff] }
  0x23   :  { %390 = vmatpush3.msra.mxu1 %v149_v6  ;;  %v244_v21 = vld [vmem:[%s709_s5 + $0x70] sm:$0xff]  ;;  %421 = vmatpush3.msra.mxu0 %v245_v20  ;;  %v243_v22 = vld [vmem:[%s709_s5 + $0x68] sm:$0xff]  ;;  %v242_v23 = vld [vmem:[%s709_s5 + $0x60] sm:$0xff] }
  0x24   :  { %391 = vmatprep.subr.mxu1 %v509_v1  ;;  %422 = vmatprep.subr.mxu0 %v509_v1  ;;  %v241_v24 = vld [vmem:[%s709_s5 + $0x58] sm:$0xff]  ;;  %v240_v25 = vld [vmem:[%s709_s5 + $0x50] sm:$0xff]  ;;  %v239_v26 = vld [vmem:[%s709_s5 + $0x48] sm:$0xff] }
  0x25   :  { %392 = vmatpush3.msra.mxu1 %v148_v7  ;;  %423 = vmatpush3.msra.mxu0 %v244_v21  ;;  %v238_v27 = vld [vmem:[%s709_s5 + $0x40] sm:$0xff]  ;;  %v237_v28 = vld [vmem:[%s709_s5 + $0x38] sm:$0xff]  ;;  %v236_v29 = vld [vmem:[%s709_s5 + $0x30] sm:$0xff] }
  0x26   :  { %393 = vmatprep.subr.mxu1 %v509_v1  ;;  %424 = vmatprep.subr.mxu0 %v509_v1  ;;  %v235_v30 = vld [vmem:[%s709_s5 + $0x28] sm:$0xff]  ;;  %v234_v31 = vld [vmem:[%s709_s5 + $0x20] sm:$0xff]  ;;  %v233_v32 = vld [vmem:[%s709_s5 + $0x18] sm:$0xff] }
  0x27   :  { %394 = vmatpush3.msra.mxu1 %v147_v8  ;;  %425 = vmatpush3.msra.mxu0 %v243_v22  ;;  %v340_v33 = vld [vmem:[#allocation5] ss:$0 sm:$0xff]  ;;  %v232_v38 = vld [vmem:[%s709_s5 + $0x10] sm:$0xff]  ;;  %v230_v40 = vld [vmem:[%s709_s5] sm:$0xff] }
  0x28   :  { %395 = vmatprep.subr.mxu1 %v509_v1  ;;  %426 = vmatprep.subr.mxu0 %v509_v1  ;;  %v231_v39 = vld [vmem:[%s709_s5 + $0x8] sm:$0xff]  ;;  %v342_v41 = vld [vmem:[%s708_s4] ss:$0 sm:$0xff] }
  0x29   :  { %396 = vmatpush3.msra.mxu1 %v146_v9  ;;  %427 = vmatpush3.msra.mxu0 %v242_v23  ;;  %v343_v46 = vld [vmem:[#allocation2] ss:$0 sm:$0xff] }
  0x2a   :  { %397 = vmatprep.subr.mxu1 %v509_v1  ;;  %428 = vmatprep.subr.mxu0 %v509_v1 }
  0x2b   :  { %398 = vmatpush3.msra.mxu1 %v145_v10  ;;  %429 = vmatpush3.msra.mxu0 %v241_v24 }
  0x2c   :  { %399 = vmatprep.subr.mxu1 %v509_v1  ;;  %430 = vmatprep.subr.mxu0 %v509_v1 }
  0x2d   :  { %400 = vmatpush3.msra.mxu1 %v144_v11  ;;  %431 = vmatpush3.msra.mxu0 %v240_v25 }
  0x2e   :  { %401 = vmatprep.subr.mxu1 %v509_v1  ;;  %432 = vmatprep.subr.mxu0 %v509_v1 }
  0x2f   :  { %402 = vmatpush3.msra.mxu1 %v143_v12  ;;  %433 = vmatpush3.msra.mxu0 %v239_v26 }
  0x30   :  { %403 = vmatprep.subr.mxu1 %v509_v1  ;;  %434 = vmatprep.subr.mxu0 %v509_v1 }
  0x31   :  { %404 = vmatpush3.msra.mxu1 %v142_v13  ;;  %435 = vmatpush3.msra.mxu0 %v238_v27 }
  0x32   :  { %405 = vmatprep.subr.mxu1 %v509_v1  ;;  %436 = vmatprep.subr.mxu0 %v509_v1 }
  0x33   :  { %406 = vmatpush3.msra.mxu1 %v141_v14  ;;  %437 = vmatpush3.msra.mxu0 %v237_v28 }
  0x34   :  { %407 = vmatprep.subr.mxu1 %v509_v1  ;;  %438 = vmatprep.subr.mxu0 %v509_v1 }
  0x35   :  { %408 = vmatpush3.msra.mxu1 %v140_v15  ;;  %439 = vmatpush3.msra.mxu0 %v236_v29 }
  0x36   :  { %409 = vmatprep.subr.mxu1 %v509_v1  ;;  %440 = vmatprep.subr.mxu0 %v509_v1 }
  0x37   :  { %410 = vmatpush3.msra.mxu1 %v139_v16  ;;  %441 = vmatpush3.msra.mxu0 %v235_v30 }
  0x38   :  { %411 = vmatprep.subr.mxu1 %v509_v1  ;;  %442 = vmatprep.subr.mxu0 %v509_v1 }
  0x39   :  { %412 = vmatpush3.msra.mxu1 %v138_v17  ;;  %443 = vmatpush3.msra.mxu0 %v234_v31 }
  0x3a   :  { %413 = vmatprep.subr.mxu1 %v509_v1  ;;  %444 = vmatprep.subr.mxu0 %v509_v1 }
  0x3b   :  { %414 = vmatpush3.msra.mxu1 %v137_v18  ;;  %445 = vmatpush3.msra.mxu0 %v233_v32 }
  0x3c   :  { %415 = vmatprep.subr.mxu1 %v509_v1  ;;  %446 = vmatprep.subr.mxu0 %v509_v1 }
  0x3d   :  { %416 = vmatpush3.msra.mxu1 %v136_v19  ;;  %447 = vmatpush3.msra.mxu0 %v232_v38 }
  0x3e   :  { %448 = vmatprep.subr.mxu0 %v509_v1 }
  0x3f   :  { %449 = vmatpush3.msra.mxu0 %v231_v39 }
  0x40   :  { %450 = vmatprep.subr.mxu0 %v509_v1 }
  0x41   :  { %451 = vmatpush3.msra.mxu0 %v230_v40 }
  0xe0   :  { %v131_v34 = vpop.f32.mrf.mxu0 }
  0xe1   :  { %v132_v35 = vadd.f32 %v340_v33, %v131_v34 }
  0xe2   :  { %v384_v36 = vpop.f32.mrf.mxu0 }
  0xe3   :  { %v135_v37 = vmax.f32 %v132_v35, 0.0 }
  0xe5   :  { %418 = vmatmul.mubr.f32.vlgmr.msra.gmra.mxu1 %v135_v37 }
 0x1a5   :  { %v225_v42 = vpop.f32.mrf.mxu1 }
 0x1a6   :  { %v226_v43 = vadd.f32 %v342_v41, %v225_v42 }
 0x1a7   :  { %v419_v44 = vpop.f32.mrf.mxu1 }
 0x1a8   :  { %v229_v45 = vmax.f32 %v226_v43, 0.0 }
 0x1aa   :  { %453 = vmatmul.mubr.f32.vlgmr.msra.gmra.mxu0 %v229_v45 }
 0x26a   :  { %v319_v47 = vpop.f32.mrf.mxu0 }
 0x26b   :  { %v320_v48 = vadd.f32 %v343_v46, %v319_v47 }
 0x26c   :  { %v454_v49 = vpop.f32.mrf.mxu0 }
 0x26d   :  { %v323_v50 = vand.u32 2147483647, %v320_v48  ;;  %vm329_vm3 = vcmp.ge.f32.partialorder %v320_v48, 0.0 }
 0x26f   :  { %v324_v51 = vsub.f32 0.0, %v323_v50 }
 0x271   :  { %v325_v52 = vmul.f32 1.442695, %v324_v51 }
 0x273   :  { %459 = vpow2.f32 %v325_v52 }
 0x280   :  { %v460_v53 = vpop.eup %459 }
 0x281   :  { %v327_v54 = vadd.f32 1.0, %v460_v53 }
 0x283   :  { %461 = vrcp.f32 %v327_v54 }
 0x290   :  { %v462_v55 = vpop.eup %461 }
 0x291   :  { %v330_v56 = vmul.f32 %v462_v55, %v460_v53 }
 0x293   :  { %v331_v57 = vsel %vm329_vm3, %v462_v55, %v330_v56 }
 0x294   :  { %333 = vst.msk [vmem:[%s711_s7] sm:$0xff] %vm332_vm2, %v331_v57 }
 0x295   :  { %338 = vsyncpa [#allocation4], 1 }
 0x296   :  { %339 = vsyncpa [#allocation6], 1 }

</bundles_post_ra>
